<compile_context>
chip_gen: v7x
topology: tpu7x:2x2x1
jax: 0.10.0
libtpu: 0.0.40
codegen_flags: <defaults>
</compile_context>

<pallas_src>
import functools

import jax
import jax.numpy as jnp
from jax import lax
from jax.experimental import pallas as pl
from jax.experimental.pallas import tpu as pltpu

MARGIN = 0.5
COS_EPS = 1e-8  # matches torch.nn.functional.cosine_similarity default eps


def _round_up(x, m):
    return (x + m - 1) // m * m


def _choose_tile(m, dpad):
    """Largest lane-aligned square tile whose working set (2 X operands +
    2 coef operands, double-buffered, + output block) fits comfortably under
    the smallest scoped-VMEM default (v5e: 16 MiB)."""
    budget = 12 * 1024 * 1024
    for t in (512, 256, 128):
        if t > 128 and m < t:
            continue
        vmem = 2 * (2 * t * dpad * 4) + 2 * (2 * t * t * 4) + 2 * 8 * 128 * 4
        if vmem <= budget:
            return t
    return 128  # TODO(synk): tile over D as well for extremely large hidden sizes.


# ----------------------------------------------------------------------------
# Pallas kernel: one (TM, TN) tile of the pairwise cosine-contrastive loss.
# ----------------------------------------------------------------------------
def _pair_loss_tile_kernel(xi_ref, xj_ref, cp_ref, cn_ref, out_ref, *, margin, eps):
    a = xi_ref[...]                                    # (TM, Dpad) f32 row tile
    b = xj_ref[...]                                    # (TN, Dpad) f32 col tile

    # Row norms: one VPU pass + lane reduction each, then a single EUP rsqrt
    # (eps-clamped like torch's cosine_similarity).
    rs_a = lax.rsqrt(jnp.maximum(jnp.sum(a * a, axis=-1, keepdims=True),
                                 eps * eps))           # (TM, 1) = 1 / max(|a|, eps)
    rs_b = lax.rsqrt(jnp.maximum(jnp.sum(b * b, axis=-1, keepdims=True),
                                 eps * eps))           # (TN, 1)

    # Pairwise cosine similarities on the MXU:
    #   cos[u, v] = (a_u . b_v) / (max(|a_u|,eps) * max(|b_v|,eps))
    bn = b * rs_b                                      # normalize columns once
    g = lax.dot_general(a, bn, (((1,), (1,)), ((), ())),
                        preferred_element_type=jnp.float32)   # (TM, TN)
    cos = g * rs_a                                     # row-broadcast scale

    dist = 1.0 - cos                                   # cosine distance
    hinge = jnp.maximum(margin - dist, 0.0)
    # coef_* already fold in: 0.5 factor, label, strict-upper-triangle pair
    # mask and padding mask.
    loss = cp_ref[...] * (dist * dist) + cn_ref[...] * (hinge * hinge)

    # Lane-dense partial-sum block (unmasked full-tile store); reduced outside.
    out_ref[...] = jnp.full(out_ref.shape, jnp.sum(loss), dtype=jnp.float32)


def _run_pair_loss_kernel(x_pad, coef_pos, coef_neg, *, tile, margin):
    mpad, dpad = x_pad.shape
    gi = mpad // tile
    gj = mpad // tile
    kernel = functools.partial(_pair_loss_tile_kernel,
                               margin=float(margin), eps=float(COS_EPS))
    partials = pl.pallas_call(
        kernel,
        out_shape=jax.ShapeDtypeStruct((gi, gj, 8, 128), jnp.float32),
        grid=(gi, gj),
        in_specs=[
            pl.BlockSpec((tile, dpad), lambda i, j: (i, 0)),   # row tile (constant over j)
            pl.BlockSpec((tile, dpad), lambda i, j: (j, 0)),   # col tile
            pl.BlockSpec((tile, tile), lambda i, j: (i, j)),   # coef_pos tile
            pl.BlockSpec((tile, tile), lambda i, j: (i, j)),   # coef_neg tile
        ],
        out_specs=pl.BlockSpec((1, 1, 8, 128), lambda i, j: (i, j, 0, 0)),
        compiler_params=pltpu.CompilerParams(
            dimension_semantics=("parallel", "parallel")),
    )(x_pad, x_pad, coef_pos, coef_neg)
    return jnp.sum(partials[:, :, 0, 0])


# ----------------------------------------------------------------------------
# JAX glue: coefficient matrices equivalent to make_samples_neg's pair list.
# ----------------------------------------------------------------------------
def _build_pair_coefficients(labels, neg_labels, m, mpad):
    # Effective label of flattened row 3*i + r:  labels[i] for r in {0,1},
    # neg_labels[i] for r == 2.  make_samples_neg's pair label is exactly
    # [eff_u == eff_v] for every pair u < v of the 3B rows.
    eff = jnp.stack([labels, labels, neg_labels], axis=1).reshape(-1)      # (3B,)
    same = (eff[:, None] == eff[None, :]).astype(jnp.float32)              # (M, M)
    idx = jnp.arange(m)
    upper = (idx[:, None] < idx[None, :]).astype(jnp.float32)              # strict triu
    coef_pos = 0.5 * same * upper
    coef_neg = 0.5 * (1.0 - same) * upper
    cp = jnp.zeros((mpad, mpad), jnp.float32).at[:m, :m].set(coef_pos)
    cn = jnp.zeros((mpad, mpad), jnp.float32).at[:m, :m].set(coef_neg)
    return cp, cn


def contrastive_loss(features, labels, neg_labels,
                     margin=MARGIN, size_average=True):
    """ContrastiveLoss.forward (in_batch_supervision=True, COSINE_DISTANCE)."""
    b, three, d = features.shape
    assert three == 3, "features must be (B, 3, D)"
    m = 3 * b
    x = features.reshape(m, d).astype(jnp.float32)

    dpad = _round_up(max(d, 128), 128)
    tile = _choose_tile(m, dpad)
    mpad = _round_up(max(m, tile), tile)

    x_pad = jnp.zeros((mpad, dpad), jnp.float32).at[:m, :d].set(x)
    coef_pos, coef_neg = _build_pair_coefficients(labels, neg_labels, m, mpad)

    total = _run_pair_loss_kernel(x_pad, coef_pos, coef_neg,
                                  tile=tile, margin=margin)
    if size_average:
        n_pairs = m * (m - 1) // 2           # == 3B + 9*B*(B-1)/2
        total = total / jnp.float32(n_pairs)
    return total


# ----------------------------------------------------------------------------
# Reference (pure JAX, mirrors the PyTorch make_samples_neg pair list exactly).
# ----------------------------------------------------------------------------
def _make_samples_neg_ref(features, labels, neg_labels):
    batch_size = features.shape[0]
    anchors, others, re_labels = [], [], []

    def eq(x, y):
        return (x == y).astype(jnp.float32)

    for i in range(batch_size):
        p1, p2, ng = features[i, 0], features[i, 1], features[i, 2]
        li, nli = labels[i], neg_labels[i]
        anchors.append(p1); others.append(p2); re_labels.append(jnp.float32(1.0))
        e_in = eq(li, nli)
        anchors.append(p2); others.append(ng); re_labels.append(e_in)
        anchors.append(p1); others.append(ng); re_labels.append(e_in)
        for j in range(i + 1, batch_size):
            f0, f1, f2 = features[j, 0], features[j, 1], features[j, 2]
            e_ll = eq(li, labels[j])
            for a_, b_ in [(p1, f0), (p2, f0), (p1, f1), (p2, f1)]:
                anchors.append(a_); others.append(b_); re_labels.append(e_ll)
            e_nl = eq(nli, labels[j])
            for a_, b_ in [(ng, f0), (ng, f1)]:
                anchors.append(a_); others.append(b_); re_labels.append(e_nl)
            e_ln = eq(li, neg_labels[j])
            for a_, b_ in [(p1, f2), (p2, f2)]:
                anchors.append(a_); others.append(b_); re_labels.append(e_ln)
            e_nn = eq(nli, neg_labels[j])
            anchors.append(ng); others.append(f2); re_labels.append(e_nn)

    return (jnp.stack(anchors).astype(jnp.float32),
            jnp.stack(others).astype(jnp.float32),
            jnp.stack(re_labels).astype(jnp.float32))


def contrastive_loss_ref(features, labels, neg_labels,
                         margin=MARGIN, size_average=True):
    a, b, lab = _make_samples_neg_ref(features, labels, neg_labels)
    dot = jnp.sum(a * b, axis=-1)
    na = jnp.linalg.norm(a, axis=-1)
    nb = jnp.linalg.norm(b, axis=-1)
    cos = dot / jnp.maximum(na * nb, COS_EPS)
    dist = 1.0 - cos
    losses = 0.5 * (lab * dist ** 2 +
                    (1.0 - lab) * jnp.maximum(margin - dist, 0.0) ** 2)
    return jnp.mean(losses) if size_average else jnp.sum(losses)


if __name__ == "__main__":
    key = jax.random.PRNGKey(0)

    for (B, D) in [(2, 32), (4, 64)]:
        k1, k2, k3, key = jax.random.split(key, 4)
        features = jax.random.normal(k1, (B, 3, D), dtype=jnp.float32)
        labels = jax.random.randint(k2, (B,), 0, 3).astype(jnp.int32)
        neg_labels = jax.random.randint(k3, (B,), 0, 3).astype(jnp.int32)

        loss = jax.block_until_ready(
            contrastive_loss(features, labels, neg_labels))
        ref = contrastive_loss_ref(features, labels, neg_labels)
        assert jnp.allclose(loss, ref, atol=1e-5, rtol=1e-4), (B, D, loss, ref)

    print("KERNEL_OK")
</pallas_src>

<mosaic_0001>
module attributes {stable_mosaic.version = 11 : i64} {
  func.func @_pair_loss_tile_kernel(%arg0: i32, %arg1: i32, %arg2: memref<128x128xf32, #tpu.memory_space<vmem>>, %arg3: memref<128x128xf32, #tpu.memory_space<vmem>>, %arg4: memref<128x128xf32, #tpu.memory_space<vmem>>, %arg5: memref<128x128xf32, #tpu.memory_space<vmem>>, %arg6: memref<1x1x8x128xf32, #tpu.memory_space<vmem>>) attributes {dimension_semantics = [#tpu.dimension_semantics<parallel>, #tpu.dimension_semantics<parallel>], iteration_bounds = array<i64: 1, 1>, scalar_prefetch = 0 : i64, scratch_operands = 0 : i64, tpu.core_type = #tpu.core_type<tc>, window_params = [{transform_indices = @transform_0, window_bounds = array<i64: 128, 128>}, {transform_indices = @transform_1, window_bounds = array<i64: 128, 128>}, {transform_indices = @transform_2, window_bounds = array<i64: 128, 128>}, {transform_indices = @transform_3, window_bounds = array<i64: 128, 128>}, {transform_indices = @transform_4, window_bounds = array<i64: 1, 1, 8, 128>}]} {
    %c0 = arith.constant 0 : index
    %c0_0 = arith.constant 0 : index
    %0 = vector.load %arg2[%c0, %c0_0] : memref<128x128xf32, #tpu.memory_space<vmem>>, vector<128x128xf32>
    %c0_1 = arith.constant 0 : index
    %c0_2 = arith.constant 0 : index
    %1 = vector.load %arg3[%c0_1, %c0_2] : memref<128x128xf32, #tpu.memory_space<vmem>>, vector<128x128xf32>
    %2 = arith.mulf %0, %0 : vector<128x128xf32>
    %cst = arith.constant dense<0.000000e+00> : vector<128xf32>
    %3 = vector.multi_reduction <add>, %2, %cst [1] : vector<128x128xf32> to vector<128xf32>
    %4 = vector.shape_cast %3 : vector<128xf32> to vector<128x1xf32>
    %cst_3 = arith.constant 1.000000e-16 : f32
    %5 = vector.broadcast %cst_3 : f32 to vector<128x1xf32>
    %6 = arith.maximumf %4, %5 : vector<128x1xf32>
    %7 = math.rsqrt %6 : vector<128x1xf32>
    %8 = arith.mulf %1, %1 : vector<128x128xf32>
    %cst_4 = arith.constant dense<0.000000e+00> : vector<128xf32>
    %9 = vector.multi_reduction <add>, %8, %cst_4 [1] : vector<128x128xf32> to vector<128xf32>
    %10 = vector.shape_cast %9 : vector<128xf32> to vector<128x1xf32>
    %cst_5 = arith.constant 1.000000e-16 : f32
    %11 = vector.broadcast %cst_5 : f32 to vector<128x1xf32>
    %12 = arith.maximumf %10, %11 : vector<128x1xf32>
    %13 = math.rsqrt %12 : vector<128x1xf32>
    %14 = vector.broadcast %13 : vector<128x1xf32> to vector<128x128xf32>
    %15 = arith.mulf %1, %14 : vector<128x128xf32>
    %cst_6 = arith.constant dense<0.000000e+00> : vector<128x128xf32>
    %16 = tpu.matmul %0, %15, %cst_6 {dimension_numbers = #tpu.dot_dimension_numbers<[1], [1], [0], [0], [0, 0, 1, 0], [], []>} : vector<128x128xf32>, vector<128x128xf32>, vector<128x128xf32> -> vector<128x128xf32>
    %17 = vector.broadcast %7 : vector<128x1xf32> to vector<128x128xf32>
    %18 = arith.mulf %16, %17 : vector<128x128xf32>
    %cst_7 = arith.constant 1.000000e+00 : f32
    %19 = vector.broadcast %cst_7 : f32 to vector<128x128xf32>
    %20 = arith.subf %19, %18 : vector<128x128xf32>
    %cst_8 = arith.constant 5.000000e-01 : f32
    %21 = vector.broadcast %cst_8 : f32 to vector<128x128xf32>
    %22 = arith.subf %21, %20 : vector<128x128xf32>
    %cst_9 = arith.constant 0.000000e+00 : f32
    %23 = vector.broadcast %cst_9 : f32 to vector<128x128xf32>
    %24 = arith.maximumf %22, %23 : vector<128x128xf32>
    %c0_10 = arith.constant 0 : index
    %c0_11 = arith.constant 0 : index
    %25 = vector.load %arg4[%c0_10, %c0_11] : memref<128x128xf32, #tpu.memory_space<vmem>>, vector<128x128xf32>
    %26 = arith.mulf %20, %20 : vector<128x128xf32>
    %27 = arith.mulf %25, %26 : vector<128x128xf32>
    %c0_12 = arith.constant 0 : index
    %c0_13 = arith.constant 0 : index
    %28 = vector.load %arg5[%c0_12, %c0_13] : memref<128x128xf32, #tpu.memory_space<vmem>>, vector<128x128xf32>
    %29 = arith.mulf %24, %24 : vector<128x128xf32>
    %30 = arith.mulf %28, %29 : vector<128x128xf32>
    %31 = arith.addf %27, %30 : vector<128x128xf32>
    %32 = vector.shape_cast %31 : vector<128x128xf32> to vector<1x128x128xf32>
    %cst_14 = arith.constant dense<0.000000e+00> : vector<1xf32>
    %33 = vector.multi_reduction <add>, %32, %cst_14 [1, 2] : vector<1x128x128xf32> to vector<1xf32>
    %34 = vector.shape_cast %33 : vector<1xf32> to vector<1x1x1xf32>
    %35 = vector.extract %34[0, 0, 0] : f32 from vector<1x1x1xf32>
    %36 = vector.broadcast %35 : f32 to vector<1x1x8x128xf32>
    %c0_15 = arith.constant 0 : index
    %c0_16 = arith.constant 0 : index
    %c0_17 = arith.constant 0 : index
    %c0_18 = arith.constant 0 : index
    %37 = vector.load %arg6[%c0_15, %c0_16, %c0_17, %c0_18] : memref<1x1x8x128xf32, #tpu.memory_space<vmem>>, vector<1x1x8x128xf32>
    tpu.vector_store %arg6[%c0_15, %c0_16, %c0_17, %c0_18], %36 {strides = array<i32>} : memref<1x1x8x128xf32, #tpu.memory_space<vmem>>, vector<1x1x8x128xf32>,
    return
  }
  func.func @transform_0(%arg0: i32, %arg1: i32) -> (i32, i32) {
    %c0_i32 = arith.constant 0 : i32
    %c0_i32_0 = arith.constant 0 : i32
    return %arg0, %c0_i32 : i32, i32
  }
  func.func @transform_1(%arg0: i32, %arg1: i32) -> (i32, i32) {
    %c0_i32 = arith.constant 0 : i32
    %c0_i32_0 = arith.constant 0 : i32
    return %arg1, %c0_i32 : i32, i32
  }
  func.func @transform_2(%arg0: i32, %arg1: i32) -> (i32, i32) {
    %c0_i32 = arith.constant 0 : i32
    return %arg0, %arg1 : i32, i32
  }
  func.func @transform_3(%arg0: i32, %arg1: i32) -> (i32, i32) {
    %c0_i32 = arith.constant 0 : i32
    return %arg0, %arg1 : i32, i32
  }
  func.func @transform_4(%arg0: i32, %arg1: i32) -> (i32, i32, i32, i32) {
    %c0_i32 = arith.constant 0 : i32
    %c0_i32_0 = arith.constant 0 : i32
    %c0_i32_1 = arith.constant 0 : i32
    return %arg0, %arg1, %c0_i32, %c0_i32_0 : i32, i32, i32, i32
  }
}

</mosaic_0001>

<bundles_post_ra>
// kernel: tpu_custom_call.1
= control target key start
LH: loop header
LB: loop body
LE: loop exit
PB: predicated region body
PF: predicated region fallthrough
CT: control target
= control target key end

     0   :  { %9 = vsyncpa [#allocation3], 0  ;;  %s1272_s0 = inlined_call_operand.hbm [shape: f32[128,128], index: 0, kind: input, shape index: {}]   ;;  %s1273_s1 = inlined_call_operand.hbm [shape: f32[128,128], index: 1, kind: input, shape index: {}]   ;;  %s1274_s2 = inlined_call_operand.hbm [shape: f32[128,128], index: 2, kind: input, shape index: {}]   ;;  %s1275_s3 = inlined_call_operand.hbm [shape: f32[128,128], index: 3, kind: input, shape index: {}]   ;;  %s1276_s4 = inlined_call_operand.hbm [shape: f32[1,1,8,128], index: 4, kind: output, shape index: {}]  }
   0x1   :  { %10 = vsyncpa [#allocation6], 0 }
   0x2   :  { %11 = vsyncpa [#allocation9], 0 }
   0x3   :  { %12 = vsyncpa [#allocation4], 0  ;;  %s972_s15 = smov [#allocation5]   ;;  %s973_s17 = smov [#allocation2]  }
   0x4   :  { %s30_s16 = sshll.u32 %s972_s15, 4  ;;  %s18_s18 = sshll.u32 %s973_s17, 4  ;;  %s31_s16 = int_to_ptr.vmem [resolvable:$true] %s30_s16  ;;  %s1004_s18 = int_to_ptr.vmem [resolvable:$true] %s18_s18 }
   0x5   :  { %s854_s21 = scalar_lea.hbm %s1273_s1, 2048 }
   0x6   :  { %p855_p0 = scmp.ne.s32.totalorder %s1273_s1, %s854_s21  ;;  %p858_p1 = scmp.lt.u32.totalorder %s854_s21, %s1273_s1 }
   0x8   :  { %p860_p2 = pnand %p858_p1, %p855_p0 }
   0xa   :  { %863 = shalt.err (!%p860_p2)
}
   0xb   :  { %s864_s26 = scalar_lea.vmem %s31_s16, 2048  ;;  %p869_p4 = scmp.lt.s32.totalorder %s31_s16, %s31_s16 }
   0xc   :  { %p865_p3 = scmp.ne.s32.totalorder %s31_s16, %s864_s26  ;;  %p870_p5 = scmp.lt.s32.totalorder %s864_s26, %s864_s26 }
   0xe   :  { %p871_p6 = por %p870_p5, %p869_p4 }
  0x10   :  { %p872_p7 = pnand %p871_p6, %p865_p3 }
  0x12   :  { %875 = shalt.err (!%p872_p7)
}
  0x13   :  { %s974_s27 = smov 128   ;;  %s975_s28 = smov 8  }
  0x14   :  { %36 = dma.hbm_to_vmem [thread:$0]  %s1273_s1, 2048, %s31_s16, [#allocation6], %s974_s27, %s974_s27, %s975_s28  }
  0x15   :  { %s876_s7 = scalar_lea.hbm %s1272_s0, 2048 }
  0x16   :  { %p877_p8 = scmp.ne.s32.totalorder %s1272_s0, %s876_s7  ;;  %p880_p9 = scmp.lt.u32.totalorder %s876_s7, %s1272_s0 }
  0x18   :  { %p882_p10 = pnand %p880_p9, %p877_p8 }
  0x1a   :  { %885 = shalt.err (!%p882_p10)
}
  0x1b   :  { %s886_s12 = scalar_lea.vmem %s1004_s18, 2048  ;;  %p891_p12 = scmp.lt.s32.totalorder %s1004_s18, %s1004_s18 }
  0x1c   :  { %p887_p11 = scmp.ne.s32.totalorder %s1004_s18, %s886_s12  ;;  %p892_p13 = scmp.lt.s32.totalorder %s886_s12, %s886_s12 }
  0x1e   :  { %p893_p0 = por %p892_p13, %p891_p12 }
  0x20   :  { %p894_p1 = pnand %p893_p0, %p887_p11 }
  0x22   :  { %897 = shalt.err (!%p894_p1)
}
  0x23   :  { %24 = dma.hbm_to_vmem [thread:$0]  %s1272_s0, 2048, %s1004_s18, [#allocation3], %s974_s27, %s974_s27, %s975_s28  }
  0x24   :  { %s976_s14 = smov [#allocation7]   ;;  %s977_s16 = smov [#allocation8]  }
  0x25   :  { %s42_s15 = sshll.u32 %s976_s14, 4  ;;  %s54_s17 = sshll.u32 %s977_s16, 4  ;;  %s43_s15 = int_to_ptr.vmem [resolvable:$true] %s42_s15  ;;  %s1041_s17 = int_to_ptr.vmem [resolvable:$true] %s54_s17 }
  0x26   :  { %s898_s21 = scalar_lea.hbm %s1274_s2, 2048 }
  0x27   :  { %p899_p2 = scmp.ne.s32.totalorder %s1274_s2, %s898_s21  ;;  %p902_p3 = scmp.lt.u32.totalorder %s898_s21, %s1274_s2 }
  0x29   :  { %p904_p4 = pnand %p902_p3, %p899_p2 }
  0x2b   :  { %907 = shalt.err (!%p904_p4)
}
  0x2c   :  { %s908_s0 = scalar_lea.vmem %s43_s15, 2048  ;;  %p913_p6 = scmp.lt.s32.totalorder %s43_s15, %s43_s15 }
  0x2d   :  { %p909_p5 = scmp.ne.s32.totalorder %s43_s15, %s908_s0  ;;  %p914_p7 = scmp.lt.s32.totalorder %s908_s0, %s908_s0 }
  0x2f   :  { %p915_p8 = por %p914_p7, %p913_p6 }
  0x31   :  { %p916_p9 = pnand %p915_p8, %p909_p5 }
  0x33   :  { %919 = shalt.err (!%p916_p9)
}
  0x34   :  { %48 = dma.hbm_to_vmem [thread:$0]  %s1274_s2, 2048, %s43_s15, [#allocation6], %s974_s27, %s974_s27, %s975_s28  }
  0x35   :  { %s920_s5 = scalar_lea.hbm %s1275_s3, 2048 }
  0x36   :  { %p921_p10 = scmp.ne.s32.totalorder %s1275_s3, %s920_s5  ;;  %p924_p11 = scmp.lt.u32.totalorder %s920_s5, %s1275_s3 }
  0x38   :  { %p926_p12 = pnand %p924_p11, %p921_p10 }
  0x3a   :  { %929 = shalt.err (!%p926_p12)
}
  0x3b   :  { %s930_s10 = scalar_lea.vmem %s1041_s17, 2048  ;;  %p935_p0 = scmp.lt.s32.totalorder %s1041_s17, %s1041_s17 }
  0x3c   :  { %p931_p13 = scmp.ne.s32.totalorder %s1041_s17, %s930_s10  ;;  %p936_p1 = scmp.lt.s32.totalorder %s930_s10, %s930_s10 }
  0x3e   :  { %p937_p2 = por %p936_p1, %p935_p0 }
  0x40   :  { %p938_p3 = pnand %p937_p2, %p931_p13 }
  0x42   :  { %941 = shalt.err (!%p938_p3)
}
  0x43   :  { %60 = dma.hbm_to_vmem [thread:$0]  %s1275_s3, 2048, %s1041_s17, [#allocation9], %s974_s27, %s974_s27, %s975_s28  }
  0x44   :  { %964 = dma.done.wait [#allocation3], 2048  }
  0x45   :  { %965 = vsyncadd [#allocation3], 4294965248 }
  0x46   :  { %966 = dma.done.wait [#allocation6], 4096  }
  0x47   :  { %967 = vsyncadd [#allocation6], 4294963200 }
  0x48   :  { %968 = dma.done.wait [#allocation9], 2048  }
  0x49   :  { %969 = vsyncadd [#allocation9], 4294965248  ;;  %v1078_v0 = vld [vmem:[#allocation5] sm:$0xff]  ;;  %v1080_v1 = vld [vmem:[#allocation5 + $0x10] sm:$0xff]  ;;  %s978_s3 = smov [#allocation10]  }
  0x4a   :  { %v1082_v2 = vld [vmem:[#allocation5 + $0x8] sm:$0xff]  ;;  %v185_v3 = vmul.f32 %v1078_v0, %v1078_v0  ;;  %v187_v4 = vmul.f32 %v1080_v1, %v1080_v1  ;;  %v1088_v5 = vld [vmem:[#allocation5 + $0x18] sm:$0xff]  ;;  %v1096_v9 = vld [vmem:[#allocation5 + $0x20] sm:$0xff]  ;;  %s634_s27 = sshll.u32 %s978_s3, 4  ;;  %s635_s27 = int_to_ptr.vmem [resolvable:$true] %s634_s27 }
  0x4b   :  { %v186_v6 = vmul.f32 %v1082_v2, %v1082_v2  ;;  %v188_v7 = vmul.f32 %v1088_v5, %v1088_v5  ;;  %v1094_v8 = vld [vmem:[#allocation5 + $0x28] sm:$0xff]  ;;  %v189_v11 = vmul.f32 %v1096_v9, %v1096_v9  ;;  %v1102_v12 = vld [vmem:[#allocation5 + $0x38] sm:$0xff]  ;;  %v1104_v13 = vld [vmem:[#allocation5 + $0x30] sm:$0xff]  ;;  %s942_s12 = scalar_lea.vmem %s635_s27, 128  ;;  %p947_p5 = scmp.lt.s32.totalorder %s635_s27, %s635_s27 }
  0x4c   :  { %201 = vadd.xlane.f32.xlu0 %v185_v3  ;;  %205 = vadd.xlane.f32.xlu1 %v187_v4  ;;  %v190_v10 = vmul.f32 %v1094_v8, %v1094_v8  ;;  %v192_v14 = vmul.f32 %v1102_v12, %v1102_v12  ;;  %v191_v15 = vmul.f32 %v1104_v13, %v1104_v13  ;;  %v1110_v16 = vld [vmem:[#allocation5 + $0x48] sm:$0xff]  ;;  %v1112_v17 = vld [vmem:[#allocation5 + $0x40] sm:$0xff]  ;;  %v1118_v20 = vld [vmem:[#allocation5 + $0x58] sm:$0xff]  ;;  %p943_p4 = scmp.ne.s32.totalorder %s635_s27, %s942_s12  ;;  %p948_p6 = scmp.lt.s32.totalorder %s942_s12, %s942_s12 }
  0x4d   :  { %v194_v18 = vmul.f32 %v1110_v16, %v1110_v16  ;;  %v193_v19 = vmul.f32 %v1112_v17, %v1112_v17  ;;  %v1120_v21 = vld [vmem:[#allocation5 + $0x50] sm:$0xff]  ;;  %v196_v22 = vmul.f32 %v1118_v20, %v1118_v20  ;;  %v1126_v24 = vld [vmem:[#allocation5 + $0x68] sm:$0xff]  ;;  %v1128_v25 = vld [vmem:[#allocation5 + $0x60] sm:$0xff] }
  0x4e   :  { %v195_v23 = vmul.f32 %v1120_v21, %v1120_v21  ;;  %v198_v26 = vmul.f32 %v1126_v24, %v1126_v24  ;;  %v197_v27 = vmul.f32 %v1128_v25, %v1128_v25  ;;  %v1134_v28 = vld [vmem:[#allocation5 + $0x78] sm:$0xff]  ;;  %v1136_v29 = vld [vmem:[#allocation5 + $0x70] sm:$0xff]  ;;  %v73_v32 = vld [vmem:[#allocation2] sm:$0xff]  ;;  %p949_p7 = por %p948_p6, %p947_p5 }
  0x4f   :  { %v200_v30 = vmul.f32 %v1134_v28, %v1134_v28  ;;  %v199_v31 = vmul.f32 %v1136_v29, %v1136_v29  ;;  %709 = vmatprep.mubr.f32.mxu0 %v73_v32  ;;  %v81_v33 = vld [vmem:[#allocation2 + $0x40] sm:$0xff]  ;;  %v1142_v34 = vld [vmem:[#allocation2 + $0x8] sm:$0xff]  ;;  %v105_v36 = vmul.f32 %v73_v32, %v73_v32  ;;  %v1146_v37 = vld [vmem:[#allocation2 + $0x10] sm:$0xff] }
  0x50   :  { %203 = vadd.xlane.f32.xlu0 %v186_v6  ;;  %207 = vadd.xlane.f32.xlu1 %v188_v7  ;;  %v106_v35 = vmul.f32 %v1142_v34, %v1142_v34  ;;  %v1148_v38 = vld [vmem:[#allocation2 + $0x18] sm:$0xff]  ;;  %v107_v40 = vmul.f32 %v1146_v37, %v1146_v37  ;;  %v1154_v41 = vld [vmem:[#allocation2 + $0x20] sm:$0xff]  ;;  %v1156_v42 = vld [vmem:[#allocation2 + $0x28] sm:$0xff]  ;;  %v113_v51 = vmul.f32 %v81_v33, %v81_v33  ;;  %p950_p8 = pnand %p949_p7, %p943_p4 }
  0x51   :  { %721 = vmatprep.mubr.f32.mxu1 %v81_v33  ;;  %v108_v39 = vmul.f32 %v1148_v38, %v1148_v38  ;;  %v110_v43 = vmul.f32 %v1156_v42, %v1156_v42  ;;  %v109_v44 = vmul.f32 %v1154_v41, %v1154_v41  ;;  %v1162_v45 = vld [vmem:[#allocation2 + $0x30] sm:$0xff]  ;;  %v1164_v46 = vld [vmem:[#allocation2 + $0x38] sm:$0xff]  ;;  %v1170_v49 = vld [vmem:[#allocation2 + $0x48] sm:$0xff] }
  0x52   :  { %v112_v47 = vmul.f32 %v1164_v46, %v1164_v46  ;;  %v111_v48 = vmul.f32 %v1162_v45, %v1162_v45  ;;  %v114_v50 = vmul.f32 %v1170_v49, %v1170_v49  ;;  %v1174_v52 = vld [vmem:[#allocation2 + $0x50] sm:$0xff]  ;;  %v1176_v53 = vld [vmem:[#allocation2 + $0x58] sm:$0xff]  ;;  %v1182_v56 = vld [vmem:[#allocation2 + $0x60] sm:$0xff] }
  0x53   :  { %v116_v54 = vmul.f32 %v1176_v53, %v1176_v53  ;;  %v115_v55 = vmul.f32 %v1174_v52, %v1174_v52  ;;  %v1184_v57 = vld [vmem:[#allocation2 + $0x68] sm:$0xff]  ;;  %v117_v59 = vmul.f32 %v1182_v56, %v1182_v56  ;;  %v1190_v60 = vld [vmem:[#allocation2 + $0x70] sm:$0xff]  ;;  %v1192_v61 = vld [vmem:[#allocation2 + $0x78] sm:$0xff] }
  0x54   :  { %211 = vadd.xlane.f32.xlu1 %v190_v10  ;;  %209 = vadd.xlane.f32.xlu0 %v189_v11  ;;  %v118_v58 = vmul.f32 %v1184_v57, %v1184_v57  ;;  %v120_v62 = vmul.f32 %v1192_v61, %v1192_v61  ;;  %v119_v63 = vmul.f32 %v1190_v60, %v1190_v60 }
  0x58   :  { %215 = vadd.xlane.f32.xlu1 %v192_v14  ;;  %213 = vadd.xlane.f32.xlu0 %v191_v15 }
  0x5c   :  { %219 = vadd.xlane.f32.xlu1 %v194_v18  ;;  %217 = vadd.xlane.f32.xlu0 %v193_v19 }
  0x60   :  { %223 = vadd.xlane.f32.xlu1 %v196_v22  ;;  %221 = vadd.xlane.f32.xlu0 %v195_v23 }
  0x64   :  { %227 = vadd.xlane.f32.xlu1 %v198_v26  ;;  %225 = vadd.xlane.f32.xlu0 %v197_v27 }
  0x68   :  { %231 = vadd.xlane.f32.xlu1 %v200_v30  ;;  %229 = vadd.xlane.f32.xlu0 %v199_v31 }
  0x6c   :  { %123 = vadd.xlane.f32.xlu1 %v106_v35  ;;  %121 = vadd.xlane.f32.xlu0 %v105_v36 }
  0x70   :  { %127 = vadd.xlane.f32.xlu1 %v108_v39  ;;  %125 = vadd.xlane.f32.xlu0 %v107_v40 }
  0x74   :  { %131 = vadd.xlane.f32.xlu1 %v110_v43  ;;  %129 = vadd.xlane.f32.xlu0 %v109_v44 }
  0x78   :  { %135 = vadd.xlane.f32.xlu1 %v112_v47  ;;  %133 = vadd.xlane.f32.xlu0 %v111_v48 }
  0x7c   :  { %139 = vadd.xlane.f32.xlu1 %v114_v50  ;;  %137 = vadd.xlane.f32.xlu0 %v113_v51 }
  0x80   :  { %143 = vadd.xlane.f32.xlu1 %v116_v54  ;;  %141 = vadd.xlane.f32.xlu0 %v115_v55 }
  0x84   :  { %147 = vadd.xlane.f32.xlu1 %v118_v58  ;;  %145 = vadd.xlane.f32.xlu0 %v117_v59 }
  0x88   :  { %151 = vadd.xlane.f32.xlu1 %v120_v62  ;;  %149 = vadd.xlane.f32.xlu0 %v119_v63 }
  0xd9   :  { %v202_v3 = vpop.xlane.xlu0 %201  ;;  %v206_v4 = vpop.xlane.xlu1 %205 }
  0xda   :  { %v233_v6 = vmax.f32 %v202_v3, 1e-16  ;;  %v235_v7 = vmax.f32 %v206_v4, 1e-16 }
  0xdc   :  { %790 = vrsqrt.f32 %v235_v7 }
  0xdd   :  { %v204_v10 = vpop.xlane.xlu0 %203  ;;  %v208_v11 = vpop.xlane.xlu1 %207  ;;  %792 = vrsqrt.f32 %v233_v6 }
  0xde   :  { %v234_v14 = vmax.f32 %v204_v10, 1e-16  ;;  %v236_v15 = vmax.f32 %v208_v11, 1e-16 }
  0xe0   :  { %794 = vrsqrt.f32 %v234_v14 }
  0xe1   :  { %796 = vrsqrt.f32 %v236_v15  ;;  %v212_v18 = vpop.xlane.xlu1 %211  ;;  %v210_v19 = vpop.xlane.xlu0 %209 }
  0xe2   :  { %v238_v22 = vmax.f32 %v212_v18, 1e-16  ;;  %v237_v23 = vmax.f32 %v210_v19, 1e-16 }
  0xe4   :  { %798 = vrsqrt.f32 %v238_v22 }
  0xe5   :  { %800 = vrsqrt.f32 %v237_v23  ;;  %v216_v26 = vpop.xlane.xlu1 %215  ;;  %v214_v27 = vpop.xlane.xlu0 %213 }
  0xe6   :  { %v791_v30 = vpop.eup %790  ;;  %v240_v31 = vmax.f32 %v216_v26, 1e-16  ;;  %v239_v33 = vmax.f32 %v214_v27, 1e-16 }
  0xe7   :  { %v793_v32 = vpop.eup %792  ;;  %v267_v36 = vmul.f32 %v791_v30, %v1080_v1 }
  0xe8   :  { %v265_v40 = vmul.f32 %v793_v32, %v1078_v0  ;;  %802 = vrsqrt.f32 %v240_v31 }
  0xe9   :  { %804 = vrsqrt.f32 %v239_v33  ;;  %v220_v47 = vpop.xlane.xlu1 %219  ;;  %v218_v50 = vpop.xlane.xlu0 %217 }
  0xea   :  { %v795_v35 = vpop.eup %794  ;;  %v242_v58 = vmax.f32 %v220_v47, 1e-16  ;;  %v241_v1 = vmax.f32 %v218_v50, 1e-16 }
  0xeb   :  { %v797_v39 = vpop.eup %796  ;;  %v266_v43 = vmul.f32 %v795_v35, %v1082_v2 }
  0xec   :  { %v268_v44 = vmul.f32 %v797_v39, %v1088_v5  ;;  %806 = vrsqrt.f32 %v242_v58 }
  0xed   :  { %v733_v48 = vpack.c.bf16 %v266_v43, %v265_v40  ;;  %808 = vrsqrt.f32 %v241_v1  ;;  %v224_v5 = vpop.xlane.xlu1 %223  ;;  %v222_v63 = vpop.xlane.xlu0 %221 }
  0xee   :  { %v799_v51 = vpop.eup %798  ;;  %v737_v54 = vpack.c.bf16 %v268_v44, %v267_v36  ;;  %v244_v4 = vmax.f32 %v224_v5, 1e-16  ;;  %v243_v6 = vmax.f32 %v222_v63, 1e-16 }
  0xef   :  { %v801_v55 = vpop.eup %800  ;;  %734 = vmatprep.subr.bf16.mxu0 %v733_v48  ;;  %765 = vmatprep.subr.bf16.mxu1 %v733_v48  ;;  %v270_v2 = vmul.f32 %v799_v51, %v1094_v8 }
  0xf0   :  { %736 = vmatpush3.bf16.xpose.msra.mxu0 %v733_v48  ;;  %773 = vmatpush3.bf16.xpose.msra.mxu1 %v733_v48  ;;  %v269_v0 = vmul.f32 %v801_v55, %v1096_v9  ;;  %810 = vrsqrt.f32 %v244_v4 }
  0xf1   :  { %738 = vmatprep.subr.bf16.mxu0 %v737_v54  ;;  %766 = vmatprep.subr.bf16.mxu1 %v737_v54  ;;  %812 = vrsqrt.f32 %v243_v6  ;;  %v228_v8 = vpop.xlane.xlu1 %227  ;;  %v226_v14 = vpop.xlane.xlu0 %225 }
  0xf2   :  { %v803_v59 = vpop.eup %802  ;;  %v741_v62 = vpack.c.bf16 %v270_v2, %v269_v0  ;;  %v246_v18 = vmax.f32 %v228_v8, 1e-16  ;;  %v245_v19 = vmax.f32 %v226_v14, 1e-16 }
  0xf3   :  { %v805_v3 = vpop.eup %804  ;;  %v272_v10 = vmul.f32 %v803_v59, %v1102_v12 }
  0xf4   :  { %v271_v7 = vmul.f32 %v805_v3, %v1104_v13  ;;  %814 = vrsqrt.f32 %v246_v18 }
  0xf5   :  { %816 = vrsqrt.f32 %v245_v19  ;;  %v232_v12 = vpop.xlane.xlu1 %231  ;;  %v230_v27 = vpop.xlane.xlu0 %229 }
  0xf6   :  { %v807_v9 = vpop.eup %806  ;;  %v745_v11 = vpack.c.bf16 %v272_v10, %v271_v7  ;;  %v248_v31 = vmax.f32 %v232_v12, 1e-16  ;;  %v247_v32 = vmax.f32 %v230_v27, 1e-16 }
  0xf7   :  { %v809_v15 = vpop.eup %808  ;;  %v274_v23 = vmul.f32 %v807_v9, %v1110_v16 }
  0xf8   :  { %740 = vmatpush3.bf16.xpose.msra.mxu0 %v737_v54  ;;  %774 = vmatpush3.bf16.xpose.msra.mxu1 %v737_v54  ;;  %v273_v22 = vmul.f32 %v809_v15, %v1112_v17  ;;  %818 = vrsqrt.f32 %v248_v31 }
  0xf9   :  { %742 = vmatprep.subr.bf16.mxu0 %v741_v62  ;;  %767 = vmatprep.subr.bf16.mxu1 %v741_v62  ;;  %820 = vrsqrt.f32 %v247_v32 }
  0xfa   :  { %v811_v13 = vpop.eup %810  ;;  %v749_v26 = vpack.c.bf16 %v274_v23, %v273_v22 }
  0xfb   :  { %v813_v30 = vpop.eup %812  ;;  %v276_v35 = vmul.f32 %v811_v13, %v1118_v20 }
  0xfc   :  { %v275_v33 = vmul.f32 %v813_v30, %v1120_v21 }
  0xfe   :  { %v815_v16 = vpop.eup %814  ;;  %v753_v17 = vpack.c.bf16 %v276_v35, %v275_v33 }
  0xff   :  { %v817_v36 = vpop.eup %816  ;;  %v278_v40 = vmul.f32 %v815_v16, %v1126_v24  ;;  %v124_v24 = vpop.xlane.xlu1 %123 }
 0x100   :  { %744 = vmatpush3.bf16.xpose.msra.mxu0 %v741_v62  ;;  %775 = vmatpush3.bf16.xpose.msra.mxu1 %v741_v62  ;;  %v277_v39 = vmul.f32 %v817_v36, %v1128_v25  ;;  %v122_v25 = vpop.xlane.xlu0 %121 }
 0x101   :  { %746 = vmatprep.subr.bf16.mxu0 %v745_v11  ;;  %768 = vmatprep.subr.bf16.mxu1 %v745_v11 }
 0x102   :  { %v819_v43 = vpop.eup %818  ;;  %v757_v44 = vpack.c.bf16 %v278_v40, %v277_v39 }
 0x103   :  { %v821_v47 = vpop.eup %820  ;;  %v280_v21 = vmul.f32 %v819_v43, %v1134_v28  ;;  %v128_v28 = vpop.xlane.xlu1 %127  ;;  %v491_v43 = vld [vmem:[#allocation7 + $0x8] sm:$0xff] }
 0x104   :  { %v279_v20 = vmul.f32 %v821_v47, %v1136_v29  ;;  %v126_v29 = vpop.xlane.xlu0 %125 }
 0x106   :  { %v761_v48 = vpack.c.bf16 %v280_v21, %v279_v20  ;;  %v539_v20 = vld [vmem:[#allocation8 + $0x8] sm:$0xff] }
 0x108   :  { %748 = vmatpush3.bf16.xpose.msra.mxu0 %v745_v11  ;;  %776 = vmatpush3.bf16.xpose.msra.mxu1 %v745_v11 }
 0x109   :  { %750 = vmatprep.subr.bf16.mxu0 %v749_v26  ;;  %769 = vmatprep.subr.bf16.mxu1 %v749_v26 }
 0x110   :  { %752 = vmatpush3.bf16.xpose.msra.mxu0 %v749_v26  ;;  %777 = vmatpush3.bf16.xpose.msra.mxu1 %v749_v26 }
 0x111   :  { %754 = vmatprep.subr.bf16.mxu0 %v753_v17  ;;  %770 = vmatprep.subr.bf16.mxu1 %v753_v17 }
 0x118   :  { %756 = vmatpush3.bf16.xpose.msra.mxu0 %v753_v17  ;;  %778 = vmatpush3.bf16.xpose.msra.mxu1 %v753_v17 }
 0x119   :  { %758 = vmatprep.subr.bf16.mxu0 %v757_v44  ;;  %771 = vmatprep.subr.bf16.mxu1 %v757_v44 }
 0x120   :  { %760 = vmatpush3.bf16.xpose.msra.mxu0 %v757_v44  ;;  %779 = vmatpush3.bf16.xpose.msra.mxu1 %v757_v44 }
 0x121   :  { %762 = vmatprep.subr.bf16.mxu0 %v761_v48  ;;  %772 = vmatprep.subr.bf16.mxu1 %v761_v48 }
 0x128   :  { %764 = vmatpush3.bf16.xpose.msra.mxu0 %v761_v48  ;;  %780 = vmatpush3.bf16.xpose.msra.mxu1 %v761_v48 }
 0x12f   :  { %710 = vmatmul.mubr.f32.vlgmr.msra.gmra.mrb[0].mxu0 %v1142_v34  ;;  %722 = vmatmul.mubr.f32.vlgmr.msra.gmra.mrb[0].mxu1 %v1170_v49  ;;  %v132_v34 = vpop.xlane.xlu1 %131 }
 0x130   :  { %712 = vmatprep.mubr.f32.mxu0 %v1146_v37  ;;  %724 = vmatprep.mubr.f32.mxu1 %v1174_v52  ;;  %v130_v37 = vpop.xlane.xlu0 %129  ;;  %v153_v52 = vmax.f32 %v122_v25, 1e-16  ;;  %v158_v50 = vmax.f32 %v132_v34, 1e-16 }
 0x131   :  { %v157_v51 = vmax.f32 %v130_v37, 1e-16  ;;  %v490_v37 = vld [vmem:[#allocation7] sm:$0xff] }
 0x133   :  { %713 = vmatmul.mubr.f32.gmra.mrb[2].mxu0 %v1148_v38  ;;  %725 = vmatmul.mubr.f32.gmra.mrb[2].mxu1 %v1176_v53  ;;  %v136_v38 = vpop.xlane.xlu1 %135 }
 0x134   :  { %715 = vmatprep.mubr.f32.mxu0 %v1154_v41  ;;  %727 = vmatprep.mubr.f32.mxu1 %v1182_v56  ;;  %v134_v41 = vpop.xlane.xlu0 %133  ;;  %v156_v56 = vmax.f32 %v128_v28, 1e-16  ;;  %v160_v55 = vmax.f32 %v136_v38, 1e-16  ;;  %v538_v38 = vld [vmem:[#allocation8] sm:$0xff] }
 0x135   :  { %v159_v0 = vmax.f32 %v134_v41, 1e-16 }
 0x137   :  { %716 = vmatmul.mubr.f32.gmra.mrb[4].mxu0 %v1156_v42  ;;  %728 = vmatmul.mubr.f32.gmra.mrb[4].mxu1 %v1184_v57  ;;  %v140_v49 = vpop.xlane.xlu1 %139  ;;  %v154_v42 = vmax.f32 %v124_v24, 1e-16 }
 0x138   :  { %718 = vmatprep.mubr.f32.mxu0 %v1162_v45  ;;  %730 = vmatprep.mubr.f32.mxu1 %v1190_v60  ;;  %v138_v53 = vpop.xlane.xlu0 %137  ;;  %v162_v57 = vmax.f32 %v140_v49, 1e-16 }
 0x139   :  { %822 = vrsqrt.f32 %v154_v42  ;;  %v161_v60 = vmax.f32 %v138_v53, 1e-16 }
 0x13a   :  { %824 = vrsqrt.f32 %v153_v52 }
 0x13b   :  { %719 = vmatmul.mubr.f32.gmra.mrb[6].mxu0 %v1164_v46  ;;  %731 = vmatmul.mubr.f32.gmra.mrb[6].mxu1 %v1192_v61  ;;  %v144_v45 = vpop.xlane.xlu1 %143  ;;  %v155_v46 = vmax.f32 %v126_v29, 1e-16  ;;  %826 = vrsqrt.f32 %v156_v56 }
 0x13c   :  { %v142_v61 = vpop.xlane.xlu0 %141  ;;  %828 = vrsqrt.f32 %v162_v57  ;;  %v164_v5 = vmax.f32 %v144_v45, 1e-16 }
 0x13d   :  { %830 = vrsqrt.f32 %v155_v46  ;;  %v163_v63 = vmax.f32 %v142_v61, 1e-16 }
 0x13e   :  { %832 = vrsqrt.f32 %v161_v60 }
 0x13f   :  { %v148_v54 = vpop.xlane.xlu1 %147  ;;  %834 = vrsqrt.f32 %v158_v50 }
 0x140   :  { %836 = vrsqrt.f32 %v157_v51  ;;  %v146_v58 = vpop.xlane.xlu0 %145  ;;  %v166_v10 = vmax.f32 %v148_v54, 1e-16 }
 0x141   :  { %838 = vrsqrt.f32 %v160_v55  ;;  %v165_v14 = vmax.f32 %v146_v58, 1e-16 }
 0x142   :  { %840 = vrsqrt.f32 %v159_v0 }
 0x143   :  { %v823_v1 = vpop.eup %822  ;;  %v152_v59 = vpop.xlane.xlu1 %151  ;;  %842 = vrsqrt.f32 %v164_v5 }
 0x144   :  { %v825_v2 = vpop.eup %824  ;;  %v168_v19 = vmax.f32 %v152_v59, 1e-16  ;;  %v1228_v22 = vpop.xlane.xlu0 %149  ;;  %844 = vrsqrt.f32 %v163_v63 }
 0x145   :  { %v827_v4 = vpop.eup %826  ;;  %846 = vrsqrt.f32 %v166_v10  ;;  %v167_v47 = vmax.f32 %v1228_v22, 1e-16 }
 0x146   :  { %v829_v9 = vpop.eup %828  ;;  %848 = vrsqrt.f32 %v165_v14 }
 0x147   :  { %v831_v15 = vpop.eup %830  ;;  %850 = vrsqrt.f32 %v168_v19 }
 0x148   :  { %v833_v26 = vpop.eup %832  ;;  %852 = vrsqrt.f32 %v167_v47 }
 0x149   :  { %v835_v35 = vpop.eup %834 }
 0x14a   :  { %v837_v39 = vpop.eup %836 }
 0x14b   :  { %v839_v60 = vpop.eup %838 }
 0x14c   :  { %v841_v55 = vpop.eup %840 }
 0x14d   :  { %v843_v63 = vpop.eup %842 }
 0x14e   :  { %v845_v14 = vpop.eup %844 }
 0x202   :  { %v711_v62 = vpop.f32.mrb[0].mxu0  ;;  %v723_v3 = vpop.f32.mrb[0].mxu1 }
 0x203   :  { %v427_v6 = vmul.f32 %v823_v1, %v711_v62  ;;  %v347_v7 = vpop.f32.mrb[1].mxu0  ;;  %v387_v8 = vpop.f32.mrb[1].mxu1  ;;  %v435_v32 = vmul.f32 %v829_v9, %v723_v3 }
 0x204   :  { %v426_v11 = vmul.f32 %v825_v2, %v347_v7  ;;  %v434_v28 = vmul.f32 %v833_v26, %v387_v8  ;;  %v492_v2 = vld [vmem:[#allocation7 + $0x10] sm:$0xff] }
 0x205   :  { %v443_v18 = vsub.f32 1.0, %v427_v6  ;;  %v1237_v52 = vsub.f32 1.0, %v435_v32  ;;  %v540_v7 = vld [vmem:[#allocation8 + $0x10] sm:$0xff] }
 0x206   :  { %v442_v23 = vsub.f32 1.0, %v426_v11  ;;  %v714_v12 = vpop.f32.mrb[2].mxu0  ;;  %v1230_v13 = vpop.f32.mrb[2].mxu1  ;;  %v450_v8 = vsub.f32 1.0, %v434_v28  ;;  %v495_v28 = vld [vmem:[#allocation7 + $0x28] sm:$0xff] }
 0x207   :  { %v459_v27 = vsub.f32 0.5, %v443_v18  ;;  %v429_v30 = vmul.f32 %v827_v4, %v714_v12  ;;  %v357_v31 = vpop.f32.mrb[3].mxu0  ;;  %v1232_v33 = vpop.f32.mrb[3].mxu1  ;;  %v507_v16 = vmul.f32 %v443_v18, %v443_v18  ;;  %v541_v4 = vld [vmem:[#allocation8 + $0x18] sm:$0xff] }
 0x208   :  { %v458_v17 = vsub.f32 0.5, %v442_v23  ;;  %v428_v36 = vmul.f32 %v831_v15, %v357_v31  ;;  %v506_v48 = vmul.f32 %v442_v23, %v442_v23  ;;  %v847_v23 = vpop.eup %846  ;;  %v493_v12 = vld [vmem:[#allocation7 + $0x18] sm:$0xff]  ;;  %v466_v47 = vsub.f32 0.5, %v450_v8 }
 0x209   :  { %v475_v40 = vmax.f32 %v459_v27, 0.0  ;;  %v445_v44 = vsub.f32 1.0, %v429_v30  ;;  %v523_v56 = vmul.f32 %v507_v16, %v491_v43  ;;  %v1245_v31 = vpop.eup %848  ;;  %v543_v43 = vld [vmem:[#allocation8 + $0x28] sm:$0xff] }
 0x20a   :  { %v474_v21 = vmax.f32 %v458_v17, 0.0  ;;  %v444_v24 = vsub.f32 1.0, %v428_v36  ;;  %v717_v25 = vpop.f32.mrb[4].mxu0  ;;  %v1235_v29 = vpop.f32.mrb[4].mxu1  ;;  %v522_v58 = vmul.f32 %v506_v48, %v490_v37  ;;  %v494_v36 = vld [vmem:[#allocation7 + $0x20] sm:$0xff] }
 0x20b   :  { %v555_v34 = vmul.f32 %v475_v40, %v475_v40  ;;  %v461_v41 = vsub.f32 0.5, %v445_v44  ;;  %v431_v49 = vmul.f32 %v835_v35, %v717_v25  ;;  %v367_v42 = vpop.f32.mrb[5].mxu0  ;;  %v1239_v53 = vpop.f32.mrb[5].mxu1  ;;  %v509_v18 = vmul.f32 %v445_v44, %v445_v44  ;;  %v542_v44 = vld [vmem:[#allocation8 + $0x20] sm:$0xff] }
 0x20c   :  { %v554_v45 = vmul.f32 %v474_v21, %v474_v21  ;;  %v460_v57 = vsub.f32 0.5, %v444_v24  ;;  %v430_v46 = vmul.f32 %v837_v39, %v367_v42  ;;  %v508_v51 = vmul.f32 %v444_v24, %v444_v24  ;;  %v851_v39 = vpop.eup %850 }
 0x20d   :  { %v571_v61 = vmul.f32 %v555_v34, %v539_v20  ;;  %v477_v50 = vmax.f32 %v461_v41, 0.0  ;;  %v447_v54 = vsub.f32 1.0, %v431_v49  ;;  %v467_v21 = vsub.f32 0.5, %v1237_v52 }
 0x20e   :  { %v570_v1 = vmul.f32 %v554_v45, %v538_v38  ;;  %v476_v0 = vmax.f32 %v460_v57, 0.0  ;;  %v446_v5 = vsub.f32 1.0, %v430_v46  ;;  %v720_v59 = vpop.f32.mrb[6].mxu0  ;;  %v1241_v62 = vpop.f32.mrb[6].mxu1  ;;  %v524_v26 = vmul.f32 %v508_v51, %v492_v2  ;;  %v499_v46 = vld [vmem:[#allocation7 + $0x48] sm:$0xff] }
 0x20f   :  { %v587_v3 = vadd.f32 %v571_v61, %v523_v56  ;;  %v557_v6 = vmul.f32 %v477_v50, %v477_v50  ;;  %v463_v10 = vsub.f32 0.5, %v447_v54  ;;  %v377_v9 = vpop.f32.mrb[7].mxu0  ;;  %v1243_v11 = vpop.f32.mrb[7].mxu1  ;;  %v511_v40 = vmul.f32 %v447_v54, %v447_v54 }
 0x210   :  { %v586_v15 = vadd.f32 %v570_v1, %v522_v58  ;;  %v556_v19 = vmul.f32 %v476_v0, %v476_v0  ;;  %v462_v22 = vsub.f32 0.5, %v446_v5  ;;  %v510_v30 = vmul.f32 %v446_v5, %v446_v5 }
 0x211   :  { %v479_v27 = vmax.f32 %v463_v10, 0.0  ;;  %v573_v35 = vmul.f32 %v557_v6, %v541_v4  ;;  %v433_v48 = vmul.f32 %v839_v60, %v720_v59  ;;  %v525_v24 = vmul.f32 %v509_v18, %v493_v12  ;;  %v545_v10 = vld [vmem:[#allocation8 + $0x38] sm:$0xff] }
 0x212   :  { %v602_v32 = vadd.f32 %v587_v3, %v586_v15  ;;  %v572_v16 = vmul.f32 %v556_v19, %v540_v7  ;;  %v478_v17 = vmax.f32 %v462_v22, 0.0  ;;  %v526_v37 = vmul.f32 %v510_v30, %v494_v36  ;;  %v853_v7 = vpop.eup %852  ;;  %v498_v15 = vld [vmem:[#allocation7 + $0x40] sm:$0xff] }
 0x213   :  { %v559_v20 = vmul.f32 %v479_v27, %v479_v27  ;;  %v515_v38 = vmul.f32 %v1237_v52, %v1237_v52  ;;  %v449_v41 = vsub.f32 1.0, %v433_v48  ;;  %v432_v49 = vmul.f32 %v841_v55, %v377_v9 }
 0x214   :  { %v588_v25 = vadd.f32 %v572_v16, %v524_v26  ;;  %v558_v34 = vmul.f32 %v478_v17, %v478_v17  ;;  %v589_v42 = vadd.f32 %v573_v35, %v525_v24  ;;  %v527_v61 = vmul.f32 %v511_v40, %v495_v28  ;;  %v544_v26 = vld [vmem:[#allocation8 + $0x30] sm:$0xff]  ;;  %v546_v35 = vld [vmem:[#allocation8 + $0x40] sm:$0xff] }
 0x215   :  { %v575_v45 = vmul.f32 %v559_v20, %v543_v43  ;;  %v483_v50 = vmax.f32 %v467_v21, 0.0  ;;  %v465_v51 = vsub.f32 0.5, %v449_v41  ;;  %v448_v60 = vsub.f32 1.0, %v432_v49 }
 0x216   :  { %v603_v56 = vadd.f32 %v602_v32, %v588_v25  ;;  %v574_v57 = vmul.f32 %v558_v34, %v542_v44  ;;  %v482_v1 = vmax.f32 %v466_v47, 0.0  ;;  %v437_v0 = vmul.f32 %v843_v63, %v1230_v13  ;;  %v496_v63 = vld [vmem:[#allocation7 + $0x30] sm:$0xff]  ;;  %v497_v32 = vld [vmem:[#allocation7 + $0x38] sm:$0xff] }
 0x217   :  { %v1251_v2 = vmul.f32 %v515_v38, %v499_v46  ;;  %v481_v5 = vmax.f32 %v465_v51, 0.0  ;;  %v514_v52 = vmul.f32 %v450_v8, %v450_v8  ;;  %v464_v59 = vsub.f32 0.5, %v448_v60 }
 0x218   :  { %v590_v54 = vadd.f32 %v574_v57, %v526_v37  ;;  %v604_v58 = vadd.f32 %v603_v56, %v589_v42  ;;  %v591_v55 = vadd.f32 %v575_v45, %v527_v61  ;;  %v453_v4 = vsub.f32 1.0, %v437_v0  ;;  %v500_v56 = vld [vmem:[#allocation7 + $0x50] sm:$0xff] }
 0x219   :  { %v436_v6 = vmul.f32 %v845_v14, %v1232_v33  ;;  %v561_v9 = vmul.f32 %v481_v5, %v481_v5  ;;  %v480_v18 = vmax.f32 %v464_v59, 0.0  ;;  %v512_v19 = vmul.f32 %v448_v60, %v448_v60  ;;  %v502_v59 = vld [vmem:[#allocation7 + $0x60] sm:$0xff] }
 0x21a   :  { %v605_v3 = vadd.f32 %v604_v58, %v590_v54  ;;  %v439_v22 = vmul.f32 %v847_v23, %v1235_v29  ;;  %v513_v12 = vmul.f32 %v449_v41, %v449_v41  ;;  %v562_v13 = vmul.f32 %v482_v1, %v482_v1  ;;  %v547_v29 = vld [vmem:[#allocation8 + $0x48] sm:$0xff] }
 0x21b   :  { %v469_v8 = vsub.f32 0.5, %v453_v4  ;;  %v563_v30 = vmul.f32 %v483_v50, %v483_v50  ;;  %v560_v16 = vmul.f32 %v480_v18, %v480_v18  ;;  %v452_v17 = vsub.f32 1.0, %v436_v6  ;;  %v549_v50 = vld [vmem:[#allocation8 + $0x58] sm:$0xff]  ;;  %v503_v18 = vld [vmem:[#allocation7 + $0x68] sm:$0xff] }
 0x21c   :  { %v606_v27 = vadd.f32 %v605_v3, %v591_v55  ;;  %v455_v33 = vsub.f32 1.0, %v439_v22  ;;  %v577_v14 = vmul.f32 %v561_v9, %v545_v10  ;;  %v530_v36 = vmul.f32 %v514_v52, %v498_v15  ;;  %v550_v55 = vld [vmem:[#allocation8 + $0x60] sm:$0xff] }
 0x21d   :  { %v438_v40 = vmul.f32 %v1245_v31, %v1239_v53  ;;  %v441_v43 = vmul.f32 %v851_v39, %v1241_v62  ;;  %v528_v23 = vmul.f32 %v512_v19, %v496_v63  ;;  %v576_v20 = vmul.f32 %v560_v16, %v544_v26  ;;  %v548_v53 = vld [vmem:[#allocation8 + $0x50] sm:$0xff]  ;;  %v501_v39 = vld [vmem:[#allocation7 + $0x58] sm:$0xff]  ;;  %v551_v19 = vld [vmem:[#allocation8 + $0x68] sm:$0xff] }
 0x21e   :  { %v485_v44 = vmax.f32 %v469_v8, 0.0  ;;  %v468_v21 = vsub.f32 0.5, %v452_v17  ;;  %v529_v48 = vmul.f32 %v513_v12, %v497_v32  ;;  %v578_v24 = vmul.f32 %v562_v13, %v546_v35 }
 0x21f   :  { %v471_v25 = vsub.f32 0.5, %v455_v33  ;;  %v454_v28 = vsub.f32 1.0, %v438_v40  ;;  %v592_v34 = vadd.f32 %v576_v20, %v528_v23  ;;  %v516_v37 = vmul.f32 %v452_v17, %v452_v17  ;;  %v504_v17 = vld [vmem:[#allocation7 + $0x70] sm:$0xff] }
 0x220   :  { %v484_v47 = vmax.f32 %v468_v21, 0.0  ;;  %v457_v38 = vsub.f32 1.0, %v441_v43  ;;  %v579_v41 = vmul.f32 %v563_v30, %v547_v29  ;;  %v593_v49 = vadd.f32 %v577_v14, %v529_v48  ;;  %v552_v40 = vld [vmem:[#allocation8 + $0x70] sm:$0xff]  ;;  %v553_v43 = vld [vmem:[#allocation8 + $0x78] sm:$0xff] }
 0x221   :  { %v517_v42 = vmul.f32 %v453_v4, %v453_v4  ;;  %v470_v31 = vsub.f32 0.5, %v454_v28  ;;  %v607_v62 = vadd.f32 %v606_v27, %v592_v34  ;;  %v565_v45 = vmul.f32 %v485_v44, %v485_v44 }
 0x222   :  { %v564_v57 = vmul.f32 %v484_v47, %v484_v47  ;;  %v487_v46 = vmax.f32 %v471_v25, 0.0  ;;  %v594_v61 = vadd.f32 %v578_v24, %v530_v36  ;;  %v473_v60 = vsub.f32 0.5, %v457_v38  ;;  %v505_v36 = vld [vmem:[#allocation7 + $0x78] sm:$0xff] }
 0x223   :  { %v486_v51 = vmax.f32 %v470_v31, 0.0  ;;  %v608_v54 = vadd.f32 %v607_v62, %v593_v49  ;;  %v532_v58 = vmul.f32 %v516_v37, %v500_v56  ;;  %v518_v0 = vmul.f32 %v454_v28, %v454_v28 }
 0x224   :  { %v580_v1 = vmul.f32 %v564_v57, %v548_v53  ;;  %v595_v5 = vadd.f32 %v579_v41, %v1251_v2  ;;  %v533_v52 = vmul.f32 %v517_v42, %v501_v39  ;;  %v440_v4 = vmul.f32 %v853_v7, %v1243_v11 }
 0x225   :  { %v566_v3 = vmul.f32 %v486_v51, %v486_v51  ;;  %v581_v6 = vmul.f32 %v565_v45, %v549_v50  ;;  %v609_v10 = vadd.f32 %v608_v54, %v594_v61  ;;  %v519_v9 = vmul.f32 %v455_v33, %v455_v33 }
 0x226   :  { %v567_v15 = vmul.f32 %v487_v46, %v487_v46  ;;  %v489_v22 = vmax.f32 %v473_v60, 0.0  ;;  %v456_v12 = vsub.f32 1.0, %v440_v4  ;;  %v596_v13 = vadd.f32 %v580_v1, %v532_v58 }
 0x227   :  { %v610_v63 = vadd.f32 %v609_v10, %v595_v5  ;;  %v534_v26 = vmul.f32 %v518_v0, %v502_v59  ;;  %v582_v27 = vmul.f32 %v566_v3, %v550_v55  ;;  %v597_v30 = vadd.f32 %v581_v6, %v533_v52 }
 0x228   :  { %v472_v8 = vsub.f32 0.5, %v456_v12  ;;  %v520_v2 = vmul.f32 %v456_v12, %v456_v12  ;;  %v535_v35 = vmul.f32 %v519_v9, %v503_v18  ;;  %v583_v16 = vmul.f32 %v567_v15, %v551_v19 }
 0x229   :  { %v611_v32 = vadd.f32 %v610_v63, %v596_v13  ;;  %v521_v11 = vmul.f32 %v457_v38, %v457_v38  ;;  %v569_v7 = vmul.f32 %v489_v22, %v489_v22  ;;  %v598_v33 = vadd.f32 %v582_v27, %v534_v26 }
 0x22a   :  { %v488_v14 = vmax.f32 %v472_v8, 0.0  ;;  %v536_v23 = vmul.f32 %v520_v2, %v504_v17  ;;  %v599_v44 = vadd.f32 %v583_v16, %v535_v35 }
 0x22b   :  { %v612_v29 = vadd.f32 %v611_v32, %v597_v30  ;;  %v537_v48 = vmul.f32 %v521_v11, %v505_v36  ;;  %v585_v25 = vmul.f32 %v569_v7, %v553_v43 }
 0x22c   :  { %v568_v20 = vmul.f32 %v488_v14, %v488_v14 }
 0x22d   :  { %v613_v21 = vadd.f32 %v612_v29, %v598_v33  ;;  %v601_v47 = vadd.f32 %v585_v25, %v537_v48 }
 0x22e   :  { %v584_v24 = vmul.f32 %v568_v20, %v552_v40 }
 0x22f   :  { %v614_v28 = vadd.f32 %v613_v21, %v599_v44 }
 0x230   :  { %v600_v34 = vadd.f32 %v584_v24, %v536_v23 }
 0x232   :  { %v615_v37 = vadd.f32 %v614_v28, %v600_v34 }
 0x234   :  { %v616_v41 = vadd.f32 %v615_v37, %v601_v47 }
 0x236   :  { %617 = vadd.xlane.f32.xlu0 %v616_v41 }
 0x2c3   :  { %v618_v38 = vpop.xlane.xlu0 %617 }
 0x2c4   :  { %v619_v49 = vrot.slane %v618_v38, 4 }
 0x2c6   :  { %v620_v42 = vadd.f32 %v619_v49, %v618_v38 }
 0x2c8   :  { %v621_v56 = vrot.slane %v620_v42, 2 }
 0x2ca   :  { %v622_v53 = vadd.f32 %v621_v56, %v620_v42 }
 0x2cc   :  { %v623_v31 = vrot.slane %v622_v53, 1 }
 0x2ce   :  { %v624_v62 = vadd.f32 %v623_v31, %v622_v53 }
 0x2d0   :  { %781 = vpush %v624_v62 }
 0x301   :  { %s782_s28 = spop %781 }
 0x302   :  { %v626_v39 = vstv %s782_s28 }
 0x303   :  { %627 = vst [vmem:[#allocation10] sm:$0xff] %v626_v39 }
 0x304   :  { %953 = shalt.err (!%p950_p8)
}
 0x305   :  { %s954_s14 = scalar_lea.hbm %s1276_s4, 128 }
 0x306   :  { %p955_p9 = scmp.ne.s32.totalorder %s1276_s4, %s954_s14  ;;  %p958_p10 = scmp.lt.u32.totalorder %s954_s14, %s1276_s4 }
 0x308   :  { %p960_p11 = pnand %p958_p10, %p955_p9 }
 0x30a   :  { %963 = shalt.err (!%p960_p11)
}
 0x30b   :  { %637 = dma.vmem_to_hbm [thread:$0]  %s635_s27, 128, %s1276_s4, [#allocation4]  }
 0x30c   :  { %970 = dma.done.wait [#allocation4], 128  }
 0x30d   :  { %971 = vsyncadd [#allocation4], 4294967168 }
 0x30e   :  { %641 = vsyncpa [#allocation3], 1 }
 0x30f   :  { %642 = vsyncpa [#allocation6], 1 }
 0x310   :  { %643 = vsyncpa [#allocation9], 1 }
 0x311   :  { %644 = vsyncpa [#allocation4], 1 }

</bundles_post_ra>
